<compile_context>
chip_gen: v5e
topology: v5e:2x2
jax: 0.10.0
libtpu: 0.0.40
codegen_flags: <defaults>
</compile_context>

<pallas_src>
import math

import jax
import jax.numpy as jnp
from jax.experimental import pallas as pl
from jax.experimental.pallas import tpu as pltpu


def attn_head_kernel(x_ref, wqkv_ref, bqkv_ref, wp_ref, bp_ref, o_ref):
    """One (batch, head) step of causal self-attention.

    x_ref    : (1, T, C)      input block for batch b
    wqkv_ref : (1, C, 3*hd)   fused, pre-transposed q/k/v weights for head h
    bqkv_ref : (1, 1, 3*hd)   fused q/k/v bias for head h
    wp_ref   : (1, hd, C)     pre-transposed output-projection rows for head h
    bp_ref   : (1, C)         output-projection bias (added once, at h == 0)
    o_ref    : (1, T, C)      output block for batch b (accumulated over h)
    """
    h = pl.program_id(1)
    x = x_ref[0]                               # (T, C)
    T = x.shape[0]
    w_qkv = wqkv_ref[0]                        # (C, 3*hd)
    hd = w_qkv.shape[-1] // 3
    scale = 1.0 / math.sqrt(hd)

    # Fused q/k/v projection for this head: one MXU pass instead of three.
    qkv = jnp.dot(x, w_qkv, preferred_element_type=jnp.float32) + bqkv_ref[0]
    q = qkv[:, 0 * hd:1 * hd]                  # (T, hd)
    k = qkv[:, 1 * hd:2 * hd]                  # (T, hd)
    v = qkv[:, 2 * hd:3 * hd]                  # (T, hd)

    # Scores q @ k^T without materializing a transpose (contract dim 1 / dim 1).
    s = jax.lax.dot_general(q, k, (((1,), (1,)), ((), ())),
                            preferred_element_type=jnp.float32) * scale

    # Causal mask (lower-triangular) == the module's registered `mask` buffer.
    row = jax.lax.broadcasted_iota(jnp.int32, (T, T), 0)
    col = jax.lax.broadcasted_iota(jnp.int32, (T, T), 1)
    s = jnp.where(col <= row, s, -jnp.inf)

    # Numerically-stable softmax; divide via EUP approximate reciprocal.
    m = jnp.max(s, axis=-1, keepdims=True)
    p = jnp.exp(s - m)
    denom = jnp.sum(p, axis=-1, keepdims=True)
    p = p * pl.reciprocal(denom, approx=True)
    # attn_drop: identity (eval mode)

    y = jnp.dot(p, v, preferred_element_type=jnp.float32)               # (T, hd)
    # Per-head slice of the output projection: Y = sum_h y_h @ Wp_h + bp.
    contrib = jnp.dot(y, wp_ref[0], preferred_element_type=jnp.float32)  # (T, C)
    # resid_drop: identity (eval mode)

    @pl.when(h == 0)
    def _():
        o_ref[0] = contrib + bp_ref[...]

    @pl.when(h > 0)
    def _():
        o_ref[0] = o_ref[0] + contrib


def causal_self_attention(x, params, n_head):
    """x: (B, T, C) f32; params in PyTorch (out_features, in_features) layout."""
    B, T, C = x.shape
    assert C % n_head == 0
    hd = C // n_head

    # ---- host-side, one-time weight re-layout (no in-kernel transposes) ----
    def w_per_head(w):            # (C_out, C_in) -> (n_head, C_in, hd)
        return jnp.transpose(w.T.reshape(C, n_head, hd), (1, 0, 2))

    def b_per_head(b):            # (C,) -> (n_head, 1, hd)
        return b.reshape(n_head, 1, hd)

    wqkv = jnp.concatenate([w_per_head(params["wq"]),
                            w_per_head(params["wk"]),
                            w_per_head(params["wv"])], axis=-1)   # (H, C, 3hd)
    bqkv = jnp.concatenate([b_per_head(params["bq"]),
                            b_per_head(params["bk"]),
                            b_per_head(params["bv"])], axis=-1)   # (H, 1, 3hd)
    wp = params["wp"].T.reshape(n_head, hd, C)                    # (H, hd, C)
    bp = params["bp"].reshape(1, C)

    # TODO(synk): for long T (>=1024), add a query-tile grid axis with online
    # softmax (flash-style), skip fully-masked KV tiles, and consider bf16
    # weights/activations feeding the MXU on v6e/v7x.
    return pl.pallas_call(
        attn_head_kernel,
        out_shape=jax.ShapeDtypeStruct((B, T, C), jnp.float32),
        grid_spec=pltpu.PrefetchScalarGridSpec(
            num_scalar_prefetch=0,
            grid=(B, n_head),
            in_specs=[
                pl.BlockSpec((1, T, C), lambda b, h: (b, 0, 0)),
                pl.BlockSpec((1, C, 3 * hd), lambda b, h: (h, 0, 0)),
                pl.BlockSpec((1, 1, 3 * hd), lambda b, h: (h, 0, 0)),
                pl.BlockSpec((1, hd, C), lambda b, h: (h, 0, 0)),
                pl.BlockSpec((1, C), lambda b, h: (0, 0)),
            ],
            out_specs=pl.BlockSpec((1, T, C), lambda b, h: (b, 0, 0)),
        ),
        compiler_params=pltpu.CompilerParams(
            dimension_semantics=("parallel", "arbitrary")),
    )(x, wqkv, bqkv, wp, bp)


# ------------------------- plain-JAX reference ------------------------------

def causal_self_attention_ref(x, params, n_head):
    B, T, C = x.shape
    hd = C // n_head

    def lin(v, w, b):
        return v @ w.T + b

    q = lin(x, params["wq"], params["bq"]).reshape(B, T, n_head, hd).transpose(0, 2, 1, 3)
    k = lin(x, params["wk"], params["bk"]).reshape(B, T, n_head, hd).transpose(0, 2, 1, 3)
    v = lin(x, params["wv"], params["bv"]).reshape(B, T, n_head, hd).transpose(0, 2, 1, 3)
    att = jnp.einsum("bhqd,bhkd->bhqk", q, k) / math.sqrt(hd)
    mask = jnp.tril(jnp.ones((T, T), bool))
    att = jnp.where(mask[None, None], att, -jnp.inf)
    att = jax.nn.softmax(att, axis=-1)
    y = jnp.einsum("bhqk,bhkd->bhqd", att, v).transpose(0, 2, 1, 3).reshape(B, T, C)
    return lin(y, params["wp"], params["bp"])


# ---------------------------------- main -------------------------------------

def make_params(key, n_embd):
    ks = jax.random.split(key, 8)

    def nrm(k, shape, scale=0.02):
        return scale * jax.random.normal(k, shape, dtype=jnp.float32)

    return {
        "wq": nrm(ks[0], (n_embd, n_embd)), "bq": nrm(ks[1], (n_embd,)),
        "wk": nrm(ks[2], (n_embd, n_embd)), "bk": nrm(ks[3], (n_embd,)),
        "wv": nrm(ks[4], (n_embd, n_embd)), "bv": nrm(ks[5], (n_embd,)),
        "wp": nrm(ks[6], (n_embd, n_embd)), "bp": nrm(ks[7], (n_embd,)),
    }


if __name__ == "__main__":
    B, T, C, n_head = 2, 8, 32, 4
    key = jax.random.PRNGKey(0)
    kx, kp = jax.random.split(key)
    x = jax.random.normal(kx, (B, T, C), dtype=jnp.float32)
    params = make_params(kp, C)

    out = causal_self_attention(x, params, n_head)
    out = jax.block_until_ready(out)

    ref = causal_self_attention_ref(x, params, n_head)
    assert out.shape == (B, T, C)
    # Tolerance loosened slightly for the EUP approximate reciprocal in softmax.
    assert jnp.allclose(out, ref, rtol=2e-3, atol=2e-3), "mismatch vs JAX reference"

    print("KERNEL_OK")
</pallas_src>

<mosaic_0001>
module attributes {stable_mosaic.version = 11 : i64} {
  func.func @attn_head_kernel(%arg0: i32, %arg1: i32, %arg2: memref<1x8x32xf32, #tpu.memory_space<vmem>>, %arg3: memref<1x32x24xf32, #tpu.memory_space<vmem>>, %arg4: memref<1x1x24xf32, #tpu.memory_space<vmem>>, %arg5: memref<1x8x32xf32, #tpu.memory_space<vmem>>, %arg6: memref<1x32xf32, #tpu.memory_space<vmem>>, %arg7: memref<1x8x32xf32, #tpu.memory_space<vmem>>) attributes {dimension_semantics = [#tpu.dimension_semantics<parallel>, #tpu.dimension_semantics<arbitrary>], iteration_bounds = array<i64: 2, 4>, scalar_prefetch = 0 : i64, scratch_operands = 0 : i64, tpu.core_type = #tpu.core_type<tc>, window_params = [{transform_indices = @transform_0, window_bounds = array<i64: 1, 8, 32>}, {transform_indices = @transform_1, window_bounds = array<i64: 1, 32, 24>}, {transform_indices = @transform_2, window_bounds = array<i64: 1, 1, 24>}, {transform_indices = @transform_3, window_bounds = array<i64: 1, 8, 32>}, {pipeline_mode = #tpu.pipeline_mode<synchronous>, transform_indices = @transform_4, window_bounds = array<i64: 1, 32>}, {transform_indices = @transform_5, window_bounds = array<i64: 1, 8, 32>}]} {
    %c0 = arith.constant 0 : index
    %c0_0 = arith.constant 0 : index
    %c0_1 = arith.constant 0 : index
    %0 = vector.load %arg2[%c0, %c0_0, %c0_1] : memref<1x8x32xf32, #tpu.memory_space<vmem>>, vector<1x8x32xf32>
    %1 = vector.shape_cast %0 : vector<1x8x32xf32> to vector<8x32xf32>
    %c0_2 = arith.constant 0 : index
    %c0_3 = arith.constant 0 : index
    %c0_4 = arith.constant 0 : index
    %2 = vector.load %arg3[%c0_2, %c0_3, %c0_4] : memref<1x32x24xf32, #tpu.memory_space<vmem>>, vector<1x32x24xf32>
    %3 = vector.shape_cast %2 : vector<1x32x24xf32> to vector<32x24xf32>
    %cst = arith.constant dense<0.000000e+00> : vector<8x24xf32>
    %4 = tpu.matmul %1, %3, %cst {dimension_numbers = #tpu.dot_dimension_numbers<[1], [0], [0], [1], [0, 0, 1, 1], [], []>} : vector<8x32xf32>, vector<32x24xf32>, vector<8x24xf32> -> vector<8x24xf32>
    %c0_5 = arith.constant 0 : index
    %c0_6 = arith.constant 0 : index
    %c0_7 = arith.constant 0 : index
    %5 = vector.load %arg4[%c0_5, %c0_6, %c0_7] : memref<1x1x24xf32, #tpu.memory_space<vmem>>, vector<1x1x24xf32>
    %6 = vector.shape_cast %5 : vector<1x1x24xf32> to vector<1x24xf32>
    %7 = vector.broadcast %6 : vector<1x24xf32> to vector<8x24xf32>
    %8 = arith.addf %4, %7 : vector<8x24xf32>
    %9 = vector.extract_strided_slice %8 {offsets = [0, 0], sizes = [8, 8], strides = [1, 1]} : vector<8x24xf32> to vector<8x8xf32>
    %10 = vector.extract_strided_slice %8 {offsets = [0, 8], sizes = [8, 8], strides = [1, 1]} : vector<8x24xf32> to vector<8x8xf32>
    %11 = vector.extract_strided_slice %8 {offsets = [0, 16], sizes = [8, 8], strides = [1, 1]} : vector<8x24xf32> to vector<8x8xf32>
    %cst_8 = arith.constant dense<0.000000e+00> : vector<8x8xf32>
    %12 = tpu.matmul %9, %10, %cst_8 {dimension_numbers = #tpu.dot_dimension_numbers<[1], [1], [0], [0], [0, 0, 1, 0], [], []>} : vector<8x8xf32>, vector<8x8xf32>, vector<8x8xf32> -> vector<8x8xf32>
    %cst_9 = arith.constant 0.353553385 : f32
    %13 = vector.broadcast %cst_9 : f32 to vector<8x8xf32>
    %14 = arith.mulf %12, %13 : vector<8x8xf32>
    %15 = tpu.iota {dimensions = array<i32: 0>} : vector<8x8xi32>
    %16 = tpu.iota {dimensions = array<i32: 1>} : vector<8x8xi32>
    %17 = arith.cmpi sle, %16, %15 : vector<8x8xi32>
    %cst_10 = arith.constant 0xFF800000 : f32
    %18 = vector.broadcast %cst_10 : f32 to vector<8x8xf32>
    %19 = arith.select %17, %14, %18 : vector<8x8xi1>, vector<8x8xf32>
    %cst_11 = arith.constant dense<0xFF800000> : vector<8xf32>
    %20 = vector.multi_reduction <maximumf>, %19, %cst_11 [1] : vector<8x8xf32> to vector<8xf32>
    %21 = vector.shape_cast %20 : vector<8xf32> to vector<8x1xf32>
    %22 = vector.broadcast %21 : vector<8x1xf32> to vector<8x8xf32>
    %23 = arith.subf %19, %22 : vector<8x8xf32>
    %24 = math.exp %23 : vector<8x8xf32>
    %cst_12 = arith.constant dense<0.000000e+00> : vector<8xf32>
    %25 = vector.multi_reduction <add>, %24, %cst_12 [1] : vector<8x8xf32> to vector<8xf32>
    %26 = vector.shape_cast %25 : vector<8xf32> to vector<8x1xf32>
    %27 = tpu.reciprocal %26 {approx = true} : vector<8x1xf32> -> vector<8x1xf32>
    %28 = vector.broadcast %27 : vector<8x1xf32> to vector<8x8xf32>
    %29 = arith.mulf %24, %28 : vector<8x8xf32>
    %cst_13 = arith.constant dense<0.000000e+00> : vector<8x8xf32>
    %30 = tpu.matmul %29, %11, %cst_13 {dimension_numbers = #tpu.dot_dimension_numbers<[1], [0], [0], [1], [0, 0, 1, 1], [], []>} : vector<8x8xf32>, vector<8x8xf32>, vector<8x8xf32> -> vector<8x8xf32>
    %c0_14 = arith.constant 0 : index
    %c0_15 = arith.constant 0 : index
    %c0_16 = arith.constant 0 : index
    %31 = vector.load %arg5[%c0_14, %c0_15, %c0_16] : memref<1x8x32xf32, #tpu.memory_space<vmem>>, vector<1x8x32xf32>
    %32 = vector.shape_cast %31 : vector<1x8x32xf32> to vector<8x32xf32>
    %cst_17 = arith.constant dense<0.000000e+00> : vector<8x32xf32>
    %33 = tpu.matmul %30, %32, %cst_17 {dimension_numbers = #tpu.dot_dimension_numbers<[1], [0], [0], [1], [0, 0, 1, 1], [], []>} : vector<8x8xf32>, vector<8x32xf32>, vector<8x32xf32> -> vector<8x32xf32>
    %c0_i32 = arith.constant 0 : i32
    %34 = arith.cmpi eq, %arg1, %c0_i32 : i32
    %35 = arith.extui %34 : i1 to i32
    %c0_i32_18 = arith.constant 0 : i32
    %36 = arith.cmpi ne, %35, %c0_i32_18 : i32
    scf.if %36 {
      %c0_21 = arith.constant 0 : index
      %c0_22 = arith.constant 0 : index
      %40 = vector.load %arg6[%c0_21, %c0_22] : memref<1x32xf32, #tpu.memory_space<vmem>>, vector<1x32xf32>
      %41 = vector.broadcast %40 : vector<1x32xf32> to vector<8x32xf32>
      %42 = arith.addf %33, %41 : vector<8x32xf32>
      %c0_23 = arith.constant 0 : index
      %c0_24 = arith.constant 0 : index
      %c0_25 = arith.constant 0 : index
      %43 = vector.load %arg7[%c0_23, %c0_24, %c0_25] : memref<1x8x32xf32, #tpu.memory_space<vmem>>, vector<1x8x32xf32>
      %44 = vector.shape_cast %43 : vector<1x8x32xf32> to vector<8x32xf32>
      %45 = vector.shape_cast %42 : vector<8x32xf32> to vector<1x8x32xf32>
      tpu.vector_store %arg7[%c0_23, %c0_24, %c0_25], %45 {strides = array<i32>} : memref<1x8x32xf32, #tpu.memory_space<vmem>>, vector<1x8x32xf32>,
    } else {
    }
    %c0_i32_19 = arith.constant 0 : i32
    %37 = arith.cmpi sgt, %arg1, %c0_i32_19 : i32
    %38 = arith.extui %37 : i1 to i32
    %c0_i32_20 = arith.constant 0 : i32
    %39 = arith.cmpi ne, %38, %c0_i32_20 : i32
    scf.if %39 {
      %c0_21 = arith.constant 0 : index
      %c0_22 = arith.constant 0 : index
      %c0_23 = arith.constant 0 : index
      %40 = vector.load %arg7[%c0_21, %c0_22, %c0_23] : memref<1x8x32xf32, #tpu.memory_space<vmem>>, vector<1x8x32xf32>
      %41 = vector.shape_cast %40 : vector<1x8x32xf32> to vector<8x32xf32>
      %42 = arith.addf %41, %33 : vector<8x32xf32>
      %c0_24 = arith.constant 0 : index
      %c0_25 = arith.constant 0 : index
      %c0_26 = arith.constant 0 : index
      %43 = vector.load %arg7[%c0_24, %c0_25, %c0_26] : memref<1x8x32xf32, #tpu.memory_space<vmem>>, vector<1x8x32xf32>
      %44 = vector.shape_cast %43 : vector<1x8x32xf32> to vector<8x32xf32>
      %45 = vector.shape_cast %42 : vector<8x32xf32> to vector<1x8x32xf32>
      tpu.vector_store %arg7[%c0_24, %c0_25, %c0_26], %45 {strides = array<i32>} : memref<1x8x32xf32, #tpu.memory_space<vmem>>, vector<1x8x32xf32>,
    } else {
    }
    return
  }
  func.func @transform_0(%arg0: i32, %arg1: i32) -> (i32, i32, i32) {
    %c0_i32 = arith.constant 0 : i32
    %c0_i32_0 = arith.constant 0 : i32
    %c0_i32_1 = arith.constant 0 : i32
    return %arg0, %c0_i32, %c0_i32_0 : i32, i32, i32
  }
  func.func @transform_1(%arg0: i32, %arg1: i32) -> (i32, i32, i32) {
    %c0_i32 = arith.constant 0 : i32
    %c0_i32_0 = arith.constant 0 : i32
    %c0_i32_1 = arith.constant 0 : i32
    return %arg1, %c0_i32, %c0_i32_0 : i32, i32, i32
  }
  func.func @transform_2(%arg0: i32, %arg1: i32) -> (i32, i32, i32) {
    %c0_i32 = arith.constant 0 : i32
    %c0_i32_0 = arith.constant 0 : i32
    %c0_i32_1 = arith.constant 0 : i32
    return %arg1, %c0_i32, %c0_i32_0 : i32, i32, i32
  }
  func.func @transform_3(%arg0: i32, %arg1: i32) -> (i32, i32, i32) {
    %c0_i32 = arith.constant 0 : i32
    %c0_i32_0 = arith.constant 0 : i32
    %c0_i32_1 = arith.constant 0 : i32
    return %arg1, %c0_i32, %c0_i32_0 : i32, i32, i32
  }
  func.func @transform_4(%arg0: i32, %arg1: i32) -> (i32, i32) {
    %c0_i32 = arith.constant 0 : i32
    %c0_i32_0 = arith.constant 0 : i32
    %c0_i32_1 = arith.constant 0 : i32
    return %c0_i32, %c0_i32_0 : i32, i32
  }
  func.func @transform_5(%arg0: i32, %arg1: i32) -> (i32, i32, i32) {
    %c0_i32 = arith.constant 0 : i32
    %c0_i32_0 = arith.constant 0 : i32
    %c0_i32_1 = arith.constant 0 : i32
    return %arg0, %c0_i32, %c0_i32_0 : i32, i32, i32
  }
}

</mosaic_0001>

<bundles_post_ra>
// kernel: tpu_custom_call.1
= control target key start
LH: loop header
LB: loop body
LE: loop exit
PB: predicated region body
PF: predicated region fallthrough
CT: control target
= control target key end

     0   :  { %10 = vsyncpa [#allocation3], 0  ;;  %s931_s0 = inlined_call_operand.vmem [shape: f32[2,8,32], index: 0, kind: input, shape index: {}]   ;;  %s932_s1 = inlined_call_operand.vmem [shape: f32[4,32,24], index: 1, kind: input, shape index: {}]   ;;  %s933_s2 = inlined_call_operand.vmem [shape: f32[4,1,24], index: 2, kind: input, shape index: {}]   ;;  %s934_s3 = inlined_call_operand.vmem [shape: f32[4,8,32], index: 3, kind: input, shape index: {}]   ;;  %s935_s4 = inlined_call_operand.vmem [shape: f32[1,32], index: 4, kind: input, shape index: {}]   ;;  %s936_s5 = inlined_call_operand.hbm [shape: f32[2,8,32], index: 5, kind: output, shape index: {}]  }
   0x1   :  { %12 = vsyncpa [#allocation3 + $0x1], 0  ;;  %s777_s18 = smov 0   ;;  %s779_s19 = smov 0  }
   0x2   :  { %s781_s20 = smov 0   ;;  %s783_s21 = smov 0  }
   0x3   :  { %s785_s22 = smov 0   ;;  %s787_s23 = smov 0  }
   0x4   :  { %s789_s24 = smov 0   ;;  %s791_s25 = smov 0  }
   0x5 LB: > { %s548_s26 = sadd.s32 4294967295, %s743_s25   ;;  %s549_s27 = sadd.s32 4294967294, %s743_s25   ;;  %s743_s25 = sphi %s791_s25, %s18_s25   ;;  %s739_s24 = sphi %s789_s24, %s952_s24   ;;  %s735_s23 = sphi %s787_s23, %s951_s23   ;;  %s731_s22 = sphi %s785_s22, %s950_s22   ;;  %s727_s21 = sphi %s783_s21, %s949_s21   ;;  %s723_s20 = sphi %s781_s20, %s948_s20   ;;  %s719_s19 = sphi %s779_s19, %s947_s19   ;;  %s715_s18 = sphi %s777_s18, %s946_s18  }
   0x6   : > { %s27_s28 = sadd.s32 1, %s735_s23  ;;  %s30_s29 = sadd.s32 1, %s739_s24 }
   0x7   : > { %p28_p0 = scmp.ge.s32.totalorder %s27_s28, 4  ;;  %p172_p1 = scmp.ne.s32.totalorder %s723_s20, %s719_s19 }
   0x8   : > { %p173_p2 = scmp.eq.s32.totalorder %s548_s26, 7  ;;  %p178_p4 = scmp.ne.s32.totalorder %s719_s19, %s715_s18 }
   0x9   : > { %s954_s28 = smov (%p28_p0, %s27_s28), 0  ;;  %s956_s29 = smov (!%p28_p0, %s30_s29), %s739_s24 }
   0xa   : > { %939 = sst [smem:[#allocation5_spill]] %s954_s28  ;;  %p826_p3 = por %p173_p2, %p172_p1 }
   0xb   : > { %p32_p5 = scmp.ge.s32.totalorder %s956_s29, 2  ;;  %p179_p6 = scmp.eq.s32.totalorder %s549_s27, 7 }
   0xc   : > { %p552_p7 = scmp.ge.s32.totalorder %s743_s25, 1  ;;  %p228_p8 = scmp.lt.s32.totalorder %s743_s25, 9 }
   0xd   : > { %s958_s29 = smov (%p32_p5, %s956_s29), 0  ;;  %p836_p9 = por %p179_p6, %p178_p4 }
   0xe   : > { %941 = sst [smem:[#allocation6_spill]] %s958_s29  ;;  %p229_p10 = pnand %p552_p7, %p228_p8 }
   0xf   : > { %s159_s7 = ssub.s32 %s739_s24, %s958_s29  ;;  %s162_s8 = sadd.s32 1, %s723_s20 }
  0x10   : > { %p160_p11 = scmp.eq.s32.totalorder %s159_s7, 0  ;;  %232 = sbr.rel (%p229_p10) target bundleno = 972 (0x3cc), region = 40 }
  0x11   : > { %s937_s10 = sand.u32 (!%p229_p10), 1, %s719_s19   ;;  %p271_p12 = scmp.lt.s32.totalorder (!%p229_p10), %s727_s21, 3 }
  0x12   : > { %s844_s9 = scalar_select %p160_p11, %s723_s20, %s162_s8  }
  0x13   : > { %s850_s11 = sshll.u32 (!%p229_p10), %s937_s10, 3  ;;  %p267_p13 = scmp.lt.s32.totalorder (!%p229_p10), %s731_s22, 1 }
  0x14   : > { %s266_s16 = scalar_lea.vmem (!%p229_p10), [#allocation2], %s850_s11  ;;  %p563_p0 = scmp.ne.s32.totalorder (!%p229_p10), %s727_s21, 0 }
  0x15   : > { %s854_s12 = scalar_select %p271_p12, %s727_s21, 3  ;;  %vm292_vm0 = vcmask 261120   ;;  %vm319_vm1 = vcmask 64512   ;;  %v345_v9 = vlaneseq }
  0x16   : > { %s268_s13 = scalar_select %p267_p13, %s731_s22, 1 }
  0x17   : > { %s569_s14 = sshll.u32 %s854_s12, 5  ;;  %s278_s17 = scalar_lea.vmem %s933_s2, %s854_s12  ;;  %v346_v10 = vshrl.u32 %v345_v9, 7  ;;  %v348_v11 = vand.u32 127, %v345_v9 }
  0x18   : > { %s275_s7 = scalar_lea.vmem %s932_s1, %s569_s14  ;;  %s554_s8 = sshll.u32 %s268_s13, 3  ;;  %v643_v5 = vld [vmem:[%s278_s17] ss:$0 sm:$0xff] }
  0x19   : > { %v287_v0 = vld [vmem:[%s275_s7 + $0x18] sm:$0xff]  ;;  %v286_v1 = vld [vmem:[%s275_s7 + $0x10] sm:$0xff]  ;;  %v285_v2 = vld [vmem:[%s275_s7 + $0x8] sm:$0xff]  ;;  %s270_s28 = scalar_lea.vmem %s931_s0, %s554_s8  ;;  %s745_s13 = smov 120   ;;  %vm349_vm2 = vcmp.le.s32.totalorder %v348_v11, %v346_v10 }
  0x1a   : > { %308 = vmatpush.msra.mxu0 %v287_v0  ;;  %v284_v3 = vld [vmem:[%s275_s7] sm:$0xff]  ;;  %s557_s29 = sshll.u32 %s854_s12, 3 }
  0x1b   : > { %v283_v4 = vld [vmem:[%s270_s28] sm:$0xff]  ;;  %s746_s28 = smov 112   ;;  %s282_s15 = scalar_lea.vmem %s934_s3, %s557_s29 }
  0x1c   : > { %309 = vmatpush.msra.mxu0 %v286_v1  ;;  %v388_v25 = vld [vmem:[%s282_s15] sm:$0xff] }
  0x1d   : > { %407 = vmatpush.msra.mxu3 %v388_v25 }
  0x1e   : > { %310 = vmatpush.msra.mxu0 %v285_v2 }
  0x20   : > { %311 = vmatpush.msra.mxu0 %v284_v3 }
  0x21   : > { %558 = vmatmul.msk.f32.vlgmr.msra.gmra.mxu0 %vm292_vm0, %v283_v4 }
  0x9e   : > { %v313_v6 = vpop.f32.mrf.mxu0 }
  0x9f   : > { %v314_v7 = vadd.f32 %v643_v5, %v313_v6 }
  0xa1   : > { %317 = vrot.lane.b32.xlu0 %v314_v7, %s745_s13 }
 0x113   : > { %v318_v8 = vpop.permute.xlu0 %317 }
 0x114   : > { %559 = vmatpush.xpose.msk.msra.mxu1 %vm319_vm1, %v318_v8 }
 0x117   : > { %560 = vmatmul.msk.f32.vlgmr.msra.gmra.mxu1 %vm319_vm1, %v314_v7 }
 0x194   : > { %v341_v12 = vpop.f32.mrf.mxu1 }
 0x195   : > { %v344_v13 = vmul.f32 0.35355338, %v341_v12 }
 0x197   : > { %v350_v14 = vsel %vm349_vm2, %v344_v13, -inf }
 0x198   : > { %v351_v15 = vsel %vm319_vm1, %v350_v14, -inf }
 0x199   : > { %352 = vmax.xlane.f32.xlu0 %v351_v15 }
 0x20c   : > { %v353_v16 = vpop.xlane.xlu0 %352 }
 0x20d   : > { %v354_v17 = vsub.f32 %v350_v14, %v353_v16 }
 0x20f   : > { %v355_v18 = vmul.f32 1.442695, %v354_v17 }
 0x211   : > { %644 = vpow2.f32 %v355_v18 }
 0x217   : > { %v645_v19 = vpop.eup %644 }
 0x218   : > { %v357_v20 = vsel %vm319_vm1, %v645_v19, 0.0 }
 0x219   : > { %358 = vadd.xlane.f32.xlu1 %v357_v20 }
 0x232   : > { %362 = vrot.lane.b32.xlu1 %v314_v7, %s746_s28 }
 0x28c   : > { %v359_v21 = vpop.xlane.xlu1 %358 }
 0x28d   : > { %646 = vrcp.f32 %v359_v21 }
 0x293   : > { %v647_v22 = vpop.eup %646 }
 0x294   : > { %v361_v24 = vmul.f32 %v647_v22, %v645_v19 }
 0x2a4   : > { %v363_v23 = vpop.permute.xlu1 %362 }
 0x2a5   : > { %383 = vmatpush.msra.mxu2 %v363_v23 }
 0x2a6   : > { %561 = vmatmul.msk.f32.vlgmr.msra.gmra.mxu2 %vm319_vm1, %v361_v24 }
 0x329   : > { %v385_v26 = vpop.f32.mrf.mxu2 }
 0x32a   : > { %562 = vmatmul.msk.f32.vlgmr.msra.gmra.mxu3 %vm319_vm1, %v385_v26 }
 0x3a9   : > { %415 = sbr.rel (%p563_p0) target bundleno = 946 (0x3b2), region = 44 }
 0x3ad   : > { %v409_v27 = vpop.f32.mrf.mxu3 }
 0x3ae   : > { %v648_v28 = vld [vmem:[%s935_s4] ss:$0 sm:$0xff] }
 0x3af   : > { %v420_v29 = vadd.f32 %v648_v28, %v409_v27 }
 0x3b1   : > { %421 = vst.msk [vmem:[%s266_s16] sm:$0xff] %vm292_vm0, %v420_v29 }
 0x3b2 PF: > { %p564_p1 = scmp.le.s32.totalorder %s727_s21, 0 }
 0x3b4   : > { %425 = sbr.rel (%p564_p1) target bundleno = 957 (0x3bd), region = 48 }
 0x3b9   : > { %v426_v30 = vld [vmem:[%s266_s16] sm:$0xff] }
 0x3ba   : > { %v427_v31 = vadd.f32 %v426_v30, %v409_v27 }
 0x3bc   : > { %428 = vst.msk [vmem:[%s266_s16] sm:$0xff] %vm292_vm0, %v427_v31 }
 0x3bd PF: > { %s566_s11 = sshll.u32 %s731_s22, 3  ;;  %s442_s8 = sshll.u32 %s266_s16, 4  ;;  %s443_s8 = int_to_ptr.vmem [resolvable:$true] %s442_s8 }
 0x3be   : > { %s440_s7 = scalar_lea.hbm %s936_s5, %s566_s11  ;;  %s943_s28 = sand.u32 1, %s719_s19  }
 0x3bf   : > { %s444_s13 = sshll.u32 %s440_s7, 4  ;;  %s430_s21 = scalar_lea.sflag [#allocation3], %s943_s28  ;;  %s445_s13 = int_to_ptr.hbm [resolvable:$true] %s444_s13 }
 0x3c0   : > { %s663_s29 = sshra.s32 %s445_s13, 4  ;;  %s669_s22 = scalar_lea.hbm %s936_s5, 16  ;;  %s664_s29 = int_to_ptr.hbm [resolvable:$true] %s663_s29 }
 0x3c1   : > { %s665_s10 = scalar_lea.hbm %s664_s29, 8  ;;  %p670_p6 = scmp.lt.s32.totalorder %s664_s29, %s936_s5 }
 0x3c2   : > { %p666_p2 = scmp.ne.s32.totalorder %s664_s29, %s665_s10  ;;  %p671_p7 = scmp.lt.s32.totalorder %s669_s22, %s665_s10 }
 0x3c4   : > { %p667_p4 = pnand %p666_p2, %p826_p3  ;;  %p672_p8 = por %p671_p7, %p670_p6 }
 0x3c6   : > { %p668_p5 = pneg %p667_p4 }
 0x3c8   : > { %p673_p10 = pnand %p672_p8, %p668_p5 }
 0x3ca   : > { %676 = shalt.err (!%p673_p10)
}
 0x3cb   : > { %570 = dma.vmem_to_hbm [thread:$0]  (%p826_p3), %s443_s8, 128, %s445_s13, %s430_s21  }
 0x3cc PF: > { %p576_p11 = scmp.ge.s32.totalorder %s743_s25, 2  ;;  %s456_s16 = sand.u32 1, %s715_s18  }
 0x3cd   : > { %s457_s11 = scalar_lea.sflag [#allocation3], %s456_s16 }
 0x3ce   : > { %p573_p12 = pnand %p576_p11, %p836_p9 }
 0x3d0   : > { %p574_p13 = pneg %p573_p12 }
 0x3d2   : > { %710 = dma.done.wait (%p574_p13), %s457_s11, 128  }
 0x3d3   : > { %712 = vsyncadd (%p574_p13), %s457_s11, 4294967168  ;;  %s18_s25 = sadd.s32 1, %s743_s25   ;;  %s944_s30 = sld [smem:[#allocation5_spill]] }
 0x3d4   : > { %p15_p0 = scmp.ge.s32.totalorder %s18_s25, 10   ;;  %s945_s12 = sld [smem:[#allocation6_spill]] }
 0x3d5   : > { %s946_s18 = smov %s719_s19  ;;  %s947_s19 = smov %s723_s20 }
 0x3d6   : > { %s948_s20 = smov %s844_s9  ;;  %s949_s21 = smov %s735_s23 }
 0x3d7   : > { %s950_s22 = smov %s739_s24  ;;  %17 = sbr.rel (!%p15_p0) target bundleno = 5 (0x5), region = 92 }
 0x3d9   : > { %s951_s23 = smov %s944_s30 }
 0x3da   : > { %s952_s24 = smov %s945_s12 }
 0x3dc   :  { %463 = vsyncpa [#allocation3], 1 }
 0x3dd   :  { %465 = vsyncpa [#allocation3 + $0x1], 1 }

</bundles_post_ra>
